<compile_context>
chip_gen: v5e
topology: v5e:2x2
jax: 0.10.0
libtpu: 0.0.40
codegen_flags: <defaults>
</compile_context>

<pallas_src>
import functools
import math

import jax
import jax.numpy as jnp
from jax.experimental import pallas as pl
from jax.experimental.pallas import tpu as pltpu


_LN_EPS = 1e-5
_ACT_DTYPE = jnp.bfloat16          # inter-kernel activation dtype (v5e HBM traffic)
_VMEM_LIMIT = 64 * 1024 * 1024     # > 32MiB default; still within v7x physical VMEM
_ROW_TILE = 512                    # row tile target for GEMM-shaped kernels
_SEQ_TILE = 128                    # time / query tile target


def _cp(n_axes):
    return pltpu.CompilerParams(
        dimension_semantics=("parallel",) * n_axes,
        vmem_limit_bytes=_VMEM_LIMIT)


def _layer_norm(x, gamma, beta, eps):
    """LayerNorm over the last dim, f32 math."""
    mu = jnp.mean(x, axis=-1, keepdims=True)
    var = jnp.mean((x - mu) * (x - mu), axis=-1, keepdims=True)
    return (x - mu) * jax.lax.rsqrt(var + eps) * gamma + beta


# ----------------------------------------------------------------------------
# Tiling helpers
# ----------------------------------------------------------------------------

def _pick_seq_tile(T, target=_SEQ_TILE):
    """Largest multiple-of-8 divisor of T that is <= target, preferring >= 2
    tiles so the time axis contributes parallel grid steps (v7x: 2 TCs)."""
    cap = min(target, T // 2 if T >= 16 else T)
    best = None
    t = 8
    while t <= cap:
        if T % t == 0:
            best = t
        t += 8
    return best if best is not None else T


def _row_tiling(N, target=_ROW_TILE):
    """Return (row_tile, padded_N).  Pads N instead of ever falling back to a
    single huge tile that could exceed the VMEM budget."""
    if N <= target:
        return N, N
    t = target - (target % 8)
    while t >= 8:
        if N % t == 0:
            return t, N
        t -= 8
    return target, ((N + target - 1) // target) * target


def _pad_rows(x2d, n_pad):
    if n_pad == x2d.shape[0]:
        return x2d
    return jnp.pad(x2d, ((0, n_pad - x2d.shape[0]), (0, 0)))


# ----------------------------------------------------------------------------
# Pallas kernels
# ----------------------------------------------------------------------------

def _posconv_block_kernel(x_ref, w_ref, b_ref, g_ref, beta_ref, o_ref, xpad_ref,
                          *, K, T, tt, eps):
    """Grouped conv1d (per-tap block-diag weights) + SamePad trim + exact GELU +
    residual + LayerNorm, for one (batch, time-tile)."""
    pad = K // 2
    t0 = pl.multiple_of(pl.program_id(1) * tt, tt)
    C = o_ref.shape[-1]

    # zero-padded f32 copy of the full sequence, built in VMEM (no HBM pad round-trip)
    xpad_ref[...] = jnp.zeros_like(xpad_ref)
    xpad_ref[pad:pad + T, :] = x_ref[0].astype(jnp.float32)

    acc = jnp.zeros((tt, C), jnp.float32)
    for k in range(K):                                   # static unroll; K small here
        xs = xpad_ref[pl.ds(t0 + k, tt), :].astype(jnp.bfloat16)       # (tt, C)
        acc = acc + jnp.dot(xs, w_ref[k], preferred_element_type=jnp.float32)
    conv = acc + b_ref[...]
    # exact (erf) GELU, matching torch.nn.GELU default
    gelu = 0.5 * conv * (1.0 + jax.lax.erf(conv * (1.0 / math.sqrt(2.0))))

    x_tile = x_ref[0, pl.ds(t0, tt), :].astype(jnp.float32)            # residual
    o_ref[0] = _layer_norm(x_tile + gelu, g_ref[...], beta_ref[...],
                           eps).astype(o_ref.dtype)


def _linear_kernel(x_ref, w_ref, b_ref, o_ref):
    """Row-tiled GEMM: o = x @ w + b (bf16 MXU, f32 accumulate)."""
    y = jnp.dot(x_ref[...].astype(jnp.bfloat16), w_ref[...],
                preferred_element_type=jnp.float32) + b_ref[...]
    o_ref[...] = y.astype(o_ref.dtype)


def _attn_core_kernel(x_ref, q_ref, k_ref, v_ref, wo_ref, bo_ref, g_ref, beta_ref,
                      o_ref, *, eps):
    """Head-batched attention core + out-proj + residual + LayerNorm for one
    (batch, query-tile).  q/k/v arrive head-major (H, S, hd) in bf16; the
    1/sqrt(hd) scale is already folded into W_q."""
    q = q_ref[0, 0]                                       # (H, tq, hd) bf16
    k = k_ref[0, 0]                                       # (H, T,  hd) bf16
    v = v_ref[0, 0]                                       # (H, T,  hd) bf16

    s = jnp.einsum("hqd,hkd->hqk", q, k,
                   preferred_element_type=jnp.float32)    # (H, tq, T) f32
    m = jnp.max(s, axis=-1, keepdims=True)
    p = jnp.exp(s - m)
    denom = jnp.sum(p, axis=-1, keepdims=True)
    p = (p * pl.reciprocal(denom, approx=True)).astype(jnp.bfloat16)   # EUP recip
    o = jnp.einsum("hqk,hkd->hqd", p, v,
                   preferred_element_type=jnp.float32)    # (H, tq, hd) f32

    # per-head output projection summed over heads == merge_heads @ W_o,
    # without any in-kernel head-merge transpose
    y = jnp.einsum("hqd,hdc->hqc", o.astype(jnp.bfloat16), wo_ref[...],
                   preferred_element_type=jnp.float32)    # (H, tq, C)
    y = jnp.sum(y, axis=0) + bo_ref[...]                  # (tq, C) f32

    x = x_ref[0].astype(jnp.float32)                      # residual (q-tile)
    o_ref[0] = _layer_norm(x + y, g_ref[...], beta_ref[...],
                           eps).astype(o_ref.dtype)


def _ffn_block_kernel(x_ref, w1_ref, b1_ref, w2_ref, b2_ref, g_ref, beta_ref,
                      lr_ref, o_ref, *, eps):
    """FFN: y = fc2(relu(fc1(x))); emits y (layer_result) and LayerNorm(x + y).
    The (tm, FFN) intermediate lives only in VMEM."""
    xb = x_ref[...].astype(jnp.bfloat16)
    h = jnp.dot(xb, w1_ref[...], preferred_element_type=jnp.float32) + b1_ref[...]
    h = jnp.maximum(h, 0.0)                                            # relu
    y = jnp.dot(h.astype(jnp.bfloat16), w2_ref[...],
                preferred_element_type=jnp.float32) + b2_ref[...]      # (tm, C)
    lr_ref[...] = y.astype(lr_ref.dtype)
    x = x_ref[...].astype(jnp.float32)
    o_ref[...] = _layer_norm(x + y, g_ref[...], beta_ref[...],
                             eps).astype(o_ref.dtype)


# ----------------------------------------------------------------------------
# Pallas wrappers
# ----------------------------------------------------------------------------

def pos_conv_block(x, w, b, gamma, beta, eps=_LN_EPS):
    """x: (B,T,C) f32; w: (K,C,C) per-tap block-diag bf16 -> bf16 (B,T,C)."""
    B, T, C = x.shape
    K = w.shape[0]
    tt = _pick_seq_tile(T)
    kern = functools.partial(_posconv_block_kernel, K=K, T=T, tt=tt, eps=eps)
    return pl.pallas_call(
        kern,
        out_shape=jax.ShapeDtypeStruct((B, T, C), _ACT_DTYPE),
        grid=(B, T // tt),
        in_specs=[
            pl.BlockSpec((1, T, C), lambda b, t: (b, 0, 0)),
            pl.BlockSpec((K, C, C), lambda b, t: (0, 0, 0)),
            pl.BlockSpec((1, C), lambda b, t: (0, 0)),
            pl.BlockSpec((1, C), lambda b, t: (0, 0)),
            pl.BlockSpec((1, C), lambda b, t: (0, 0)),
        ],
        out_specs=pl.BlockSpec((1, tt, C), lambda b, t: (b, t, 0)),
        scratch_shapes=[pltpu.VMEM((T + K, C), jnp.float32)],
        compiler_params=_cp(2),
    )(x, w, b.reshape(1, C), gamma.reshape(1, C), beta.reshape(1, C))


def linear_rows(x2d, w, b, out_dtype=_ACT_DTYPE):
    """Row-tiled GEMM: (N, Cin) @ (Cin, Cout) + b -> (N, Cout)."""
    N, Cin = x2d.shape
    M = w.shape[1]
    tm, n_pad = _row_tiling(N)
    xp = _pad_rows(x2d, n_pad)
    out = pl.pallas_call(
        _linear_kernel,
        out_shape=jax.ShapeDtypeStruct((n_pad, M), out_dtype),
        grid=(n_pad // tm,),
        in_specs=[
            pl.BlockSpec((tm, Cin), lambda i: (i, 0)),
            pl.BlockSpec((Cin, M), lambda i: (0, 0)),
            pl.BlockSpec((1, M), lambda i: (0, 0)),
        ],
        out_specs=pl.BlockSpec((tm, M), lambda i: (i, 0)),
        compiler_params=_cp(1),
    )(xp, w, b.reshape(1, M))
    return out[:N] if n_pad != N else out


def attn_core_block(x, qkv_hm, wo3, bo, gamma, beta, eps=_LN_EPS):
    """x: (B,T,C) bf16; qkv_hm: (B,3,H,T,hd) bf16 head-major; -> bf16 (B,T,C)."""
    B, T, C = x.shape
    _, _, H, _, hd = qkv_hm.shape
    tq = _pick_seq_tile(T)
    kern = functools.partial(_attn_core_kernel, eps=eps)
    return pl.pallas_call(
        kern,
        out_shape=jax.ShapeDtypeStruct((B, T, C), _ACT_DTYPE),
        grid=(B, T // tq),
        in_specs=[
            pl.BlockSpec((1, tq, C), lambda b, q: (b, q, 0)),           # residual x
            pl.BlockSpec((1, 1, H, tq, hd), lambda b, q: (b, 0, 0, q, 0)),  # Q tile
            pl.BlockSpec((1, 1, H, T, hd), lambda b, q: (b, 1, 0, 0, 0)),   # K full
            pl.BlockSpec((1, 1, H, T, hd), lambda b, q: (b, 2, 0, 0, 0)),   # V full
            pl.BlockSpec((H, hd, C), lambda b, q: (0, 0, 0)),
            pl.BlockSpec((1, C), lambda b, q: (0, 0)),
            pl.BlockSpec((1, C), lambda b, q: (0, 0)),
            pl.BlockSpec((1, C), lambda b, q: (0, 0)),
        ],
        out_specs=pl.BlockSpec((1, tq, C), lambda b, q: (b, q, 0)),
        compiler_params=_cp(2),
    )(x, qkv_hm, qkv_hm, qkv_hm, wo3, bo.reshape(1, C),
      gamma.reshape(1, C), beta.reshape(1, C))


def ffn_block(x2d, w1, b1, w2, b2, gamma, beta, eps=_LN_EPS):
    """x2d: (N, C) -> (layer_result (N,C), LayerNorm(x + FFN(x)) (N,C)), both bf16."""
    N, C = x2d.shape
    F = w1.shape[1]
    tm, n_pad = _row_tiling(N)
    xp = _pad_rows(x2d, n_pad)
    kern = functools.partial(_ffn_block_kernel, eps=eps)
    lr, out = pl.pallas_call(
        kern,
        out_shape=(jax.ShapeDtypeStruct((n_pad, C), _ACT_DTYPE),
                   jax.ShapeDtypeStruct((n_pad, C), _ACT_DTYPE)),
        grid=(n_pad // tm,),
        in_specs=[
            pl.BlockSpec((tm, C), lambda i: (i, 0)),
            pl.BlockSpec((C, F), lambda i: (0, 0)),
            pl.BlockSpec((1, F), lambda i: (0, 0)),
            pl.BlockSpec((F, C), lambda i: (0, 0)),
            pl.BlockSpec((1, C), lambda i: (0, 0)),
            pl.BlockSpec((1, C), lambda i: (0, 0)),
            pl.BlockSpec((1, C), lambda i: (0, 0)),
        ],
        out_specs=(pl.BlockSpec((tm, C), lambda i: (i, 0)),
                   pl.BlockSpec((tm, C), lambda i: (i, 0))),
        compiler_params=_cp(1),
    )(xp, w1, b1.reshape(1, F), w2, b2.reshape(1, C),
      gamma.reshape(1, C), beta.reshape(1, C))
    if n_pad != N:
        lr, out = lr[:N], out[:N]
    return lr, out


# ----------------------------------------------------------------------------
# Parameter construction (deterministic, synthetic)
# ----------------------------------------------------------------------------

def build_pertap_conv_weight(conv_w, groups):
    """torch Conv1d weight (C_out, C_in_per_group, K) -> per-tap block-diagonal
    (K, C_in, C_out) suitable for x @ W_k."""
    C, Cg, K = conv_w.shape
    wg = conv_w.reshape(groups, Cg, Cg, K)               # (G, Cg_out, Cg_in, K)
    wg = jnp.transpose(wg, (3, 0, 2, 1))                 # (K, G, Cg_in, Cg_out)
    w = jnp.zeros((K, C, C), jnp.float32)
    for g in range(groups):
        w = w.at[:, g * Cg:(g + 1) * Cg, g * Cg:(g + 1) * Cg].set(wg[:, g])
    return w


def init_params(key, C, FFN, H, K, G, n_layers):
    keys = jax.random.split(key, 1 + n_layers)
    # pos_conv init: normal(0, sqrt(4/(K*C))), bias 0. weight_norm at init
    # reproduces the same effective weight (real checkpoints must fold g/v).
    std_conv = math.sqrt(4.0 / (K * C))
    conv_w_torch = std_conv * jax.random.normal(keys[0], (C, C // G, K), jnp.float32)
    hd = C // H
    scale = hd ** -0.5
    params = {
        "num_heads": H,
        "conv_w": build_pertap_conv_weight(conv_w_torch, G).astype(jnp.bfloat16),
        "conv_b": jnp.zeros((C,), jnp.float32),
        "enc_ln_g": jnp.ones((C,), jnp.float32),
        "enc_ln_b": jnp.zeros((C,), jnp.float32),
        "layers": [],
    }
    for i in range(n_layers):
        lk = jax.random.split(keys[1 + i], 6)
        nrm = lambda k_, shp: 0.02 * jax.random.normal(k_, shp, jnp.float32)
        wq, wk, wv = nrm(lk[0], (C, C)), nrm(lk[1], (C, C)), nrm(lk[2], (C, C))
        wo = nrm(lk[3], (C, C))
        params["layers"].append({
            # 1/sqrt(hd) folded into the Q columns (a nonzero Q bias would be
            # scaled the same way); weights (in, out) layout, bf16 for the MXU.
            "wqkv": jnp.concatenate([wq * scale, wk, wv], axis=1).astype(jnp.bfloat16),
            "bqkv": jnp.zeros((3 * C,), jnp.float32),
            "wo3": wo.reshape(H, hd, C).astype(jnp.bfloat16),
            "bo": jnp.zeros((C,), jnp.float32),
            "w1": nrm(lk[4], (C, FFN)).astype(jnp.bfloat16),
            "b1": jnp.zeros((FFN,), jnp.float32),
            "w2": nrm(lk[5], (FFN, C)).astype(jnp.bfloat16),
            "b2": jnp.zeros((C,), jnp.float32),
            "sa_ln_g": jnp.ones((C,), jnp.float32),
            "sa_ln_b": jnp.zeros((C,), jnp.float32),
            "fin_ln_g": jnp.ones((C,), jnp.float32),
            "fin_ln_b": jnp.zeros((C,), jnp.float32),
        })
    return params


# ----------------------------------------------------------------------------
# Forward (extract_features + forward; layer_norm_first=False, eval mode)
# ----------------------------------------------------------------------------

def transformer_encoder_forward(params, x):
    B, T, C = x.shape
    H = params["num_heads"]
    hd = C // H

    # positional conv -> SamePad trim -> GELU -> residual -> encoder LayerNorm
    xf = pos_conv_block(x, params["conv_w"], params["conv_b"],
                        params["enc_ln_g"], params["enc_ln_b"])      # bf16 (B,T,C)

    layer_results = []
    for lp in params["layers"]:
        # QKV projection as a row-tiled GEMM (scale already folded into W_q)
        qkv = linear_rows(xf.reshape(B * T, C), lp["wqkv"], lp["bqkv"])  # (B*T, 3C) bf16
        # head-major layout for the attention core (layout plumbing so in-kernel
        # matmuls are head-batched and transpose-free)
        qkv_hm = qkv.reshape(B, T, 3, H, hd).transpose(0, 2, 3, 1, 4)    # (B,3,H,T,hd)
        xf = attn_core_block(xf, qkv_hm, lp["wo3"], lp["bo"],
                             lp["sa_ln_g"], lp["sa_ln_b"])               # + add + LN
        # FFN block (fc1 + relu + fc2 + add + LN); emits layer_result too
        lr, x2 = ffn_block(xf.reshape(B * T, C), lp["w1"], lp["b1"],
                           lp["w2"], lp["b2"], lp["fin_ln_g"], lp["fin_ln_b"])
        xf = x2.reshape(B, T, C)
        # need_weights=False -> attn is None; layer_results kept in bf16
        layer_results.append((xf, None, lr.reshape(B, T, C)))

    # layer_norm_first=False -> no encoder-level final LayerNorm here
    return xf.astype(x.dtype), layer_results


# ----------------------------------------------------------------------------
# Main
# ----------------------------------------------------------------------------

if __name__ == "__main__":
    B, T, C = 2, 16, 32          # batch, time, encoder_embed_dim
    H = 4                        # encoder_attention_heads
    FFN = 64                     # encoder_ffn_embed_dim
    K = 8                        # conv_pos (even -> SamePad trims one sample)
    G = 4                        # conv_pos_groups
    n_layers = 2                 # encoder_layers

    key = jax.random.PRNGKey(0)
    k_x, k_p = jax.random.split(key)
    x = jax.random.normal(k_x, (B, T, C), jnp.float32)
    params = init_params(k_p, C, FFN, H, K, G, n_layers)

    out, layer_results = transformer_encoder_forward(params, x)
    out = jax.block_until_ready(out)
    assert out.shape == (B, T, C) and out.dtype == x.dtype
    assert len(layer_results) == n_layers
    print("KERNEL_OK")
</pallas_src>

<mosaic_0001>
module attributes {stable_mosaic.version = 11 : i64} {
  func.func @_posconv_block_kernel(%arg0: i32, %arg1: i32, %arg2: memref<1x16x32xf32, #tpu.memory_space<vmem>>, %arg3: memref<8x32x32xbf16, #tpu.memory_space<vmem>>, %arg4: memref<1x32xf32, #tpu.memory_space<vmem>>, %arg5: memref<1x32xf32, #tpu.memory_space<vmem>>, %arg6: memref<1x32xf32, #tpu.memory_space<vmem>>, %arg7: memref<1x8x32xbf16, #tpu.memory_space<vmem>>, %arg8: memref<24x32xf32, #tpu.memory_space<vmem>>) attributes {dimension_semantics = [#tpu.dimension_semantics<parallel>, #tpu.dimension_semantics<parallel>], iteration_bounds = array<i64: 2, 2>, scalar_prefetch = 0 : i64, scratch_operands = 1 : i64, tpu.core_type = #tpu.core_type<tc>, window_params = [{transform_indices = @transform_0, window_bounds = array<i64: 1, 16, 32>}, {pipeline_mode = #tpu.pipeline_mode<synchronous>, transform_indices = @transform_1, window_bounds = array<i64: 8, 32, 32>}, {pipeline_mode = #tpu.pipeline_mode<synchronous>, transform_indices = @transform_2, window_bounds = array<i64: 1, 32>}, {pipeline_mode = #tpu.pipeline_mode<synchronous>, transform_indices = @transform_3, window_bounds = array<i64: 1, 32>}, {pipeline_mode = #tpu.pipeline_mode<synchronous>, transform_indices = @transform_4, window_bounds = array<i64: 1, 32>}, {transform_indices = @transform_5, window_bounds = array<i64: 1, 8, 32>}]} {
    %c8_i32 = arith.constant 8 : i32
    %0 = arith.muli %arg1, %c8_i32 : i32
    %1 = tpu.assume_multiple %0, 8 : i32
    %cst = arith.constant 0.000000e+00 : f32
    %2 = vector.broadcast %cst : f32 to vector<24x32xf32>
    %c0 = arith.constant 0 : index
    %c0_0 = arith.constant 0 : index
    %3 = vector.load %arg8[%c0, %c0_0] : memref<24x32xf32, #tpu.memory_space<vmem>>, vector<24x32xf32>
    tpu.vector_store %arg8[%c0, %c0_0], %2 {strides = array<i32>} : memref<24x32xf32, #tpu.memory_space<vmem>>, vector<24x32xf32>,
    %c0_1 = arith.constant 0 : index
    %c0_2 = arith.constant 0 : index
    %c0_3 = arith.constant 0 : index
    %4 = vector.load %arg2[%c0_1, %c0_2, %c0_3] : memref<1x16x32xf32, #tpu.memory_space<vmem>>, vector<1x16x32xf32>
    %5 = vector.shape_cast %4 : vector<1x16x32xf32> to vector<16x32xf32>
    %c4 = arith.constant 4 : index
    %c0_4 = arith.constant 0 : index
    %6 = vector.load %arg8[%c4, %c0_4] : memref<24x32xf32, #tpu.memory_space<vmem>>, vector<16x32xf32>
    tpu.vector_store %arg8[%c4, %c0_4], %5 {strides = array<i32>} : memref<24x32xf32, #tpu.memory_space<vmem>>, vector<16x32xf32>,
    %cst_5 = arith.constant 0.000000e+00 : f32
    %7 = vector.broadcast %cst_5 : f32 to vector<8x32xf32>
    %c0_i32 = arith.constant 0 : i32
    %8 = arith.addi %1, %c0_i32 : i32
    %9 = arith.index_cast %8 : i32 to index
    %c0_6 = arith.constant 0 : index
    %10 = vector.load %arg8[%9, %c0_6] : memref<24x32xf32, #tpu.memory_space<vmem>>, vector<8x32xf32>
    %11 = arith.truncf %10 : vector<8x32xf32> to vector<8x32xbf16>
    %c0_7 = arith.constant 0 : index
    %c0_8 = arith.constant 0 : index
    %c0_9 = arith.constant 0 : index
    %12 = vector.load %arg3[%c0_7, %c0_8, %c0_9] : memref<8x32x32xbf16, #tpu.memory_space<vmem>>, vector<1x32x32xbf16>
    %13 = vector.shape_cast %12 : vector<1x32x32xbf16> to vector<32x32xbf16>
    %cst_10 = arith.constant dense<0.000000e+00> : vector<8x32xf32>
    %14 = tpu.matmul %11, %13, %cst_10 {dimension_numbers = #tpu.dot_dimension_numbers<[1], [0], [0], [1], [0, 0, 1, 1], [], []>} : vector<8x32xbf16>, vector<32x32xbf16>, vector<8x32xf32> -> vector<8x32xf32>
    %15 = arith.addf %7, %14 : vector<8x32xf32>
    %c1_i32 = arith.constant 1 : i32
    %16 = arith.addi %1, %c1_i32 : i32
    %17 = arith.index_cast %16 : i32 to index
    %c0_11 = arith.constant 0 : index
    %18 = vector.load %arg8[%17, %c0_11] : memref<24x32xf32, #tpu.memory_space<vmem>>, vector<8x32xf32>
    %19 = arith.truncf %18 : vector<8x32xf32> to vector<8x32xbf16>
    %c1 = arith.constant 1 : index
    %c0_12 = arith.constant 0 : index
    %c0_13 = arith.constant 0 : index
    %20 = vector.load %arg3[%c1, %c0_12, %c0_13] : memref<8x32x32xbf16, #tpu.memory_space<vmem>>, vector<1x32x32xbf16>
    %21 = vector.shape_cast %20 : vector<1x32x32xbf16> to vector<32x32xbf16>
    %cst_14 = arith.constant dense<0.000000e+00> : vector<8x32xf32>
    %22 = tpu.matmul %19, %21, %cst_14 {dimension_numbers = #tpu.dot_dimension_numbers<[1], [0], [0], [1], [0, 0, 1, 1], [], []>} : vector<8x32xbf16>, vector<32x32xbf16>, vector<8x32xf32> -> vector<8x32xf32>
    %23 = arith.addf %15, %22 : vector<8x32xf32>
    %c2_i32 = arith.constant 2 : i32
    %24 = arith.addi %1, %c2_i32 : i32
    %25 = arith.index_cast %24 : i32 to index
    %c0_15 = arith.constant 0 : index
    %26 = vector.load %arg8[%25, %c0_15] : memref<24x32xf32, #tpu.memory_space<vmem>>, vector<8x32xf32>
    %27 = arith.truncf %26 : vector<8x32xf32> to vector<8x32xbf16>
    %c2 = arith.constant 2 : index
    %c0_16 = arith.constant 0 : index
    %c0_17 = arith.constant 0 : index
    %28 = vector.load %arg3[%c2, %c0_16, %c0_17] : memref<8x32x32xbf16, #tpu.memory_space<vmem>>, vector<1x32x32xbf16>
    %29 = vector.shape_cast %28 : vector<1x32x32xbf16> to vector<32x32xbf16>
    %cst_18 = arith.constant dense<0.000000e+00> : vector<8x32xf32>
    %30 = tpu.matmul %27, %29, %cst_18 {dimension_numbers = #tpu.dot_dimension_numbers<[1], [0], [0], [1], [0, 0, 1, 1], [], []>} : vector<8x32xbf16>, vector<32x32xbf16>, vector<8x32xf32> -> vector<8x32xf32>
    %31 = arith.addf %23, %30 : vector<8x32xf32>
    %c3_i32 = arith.constant 3 : i32
    %32 = arith.addi %1, %c3_i32 : i32
    %33 = arith.index_cast %32 : i32 to index
    %c0_19 = arith.constant 0 : index
    %34 = vector.load %arg8[%33, %c0_19] : memref<24x32xf32, #tpu.memory_space<vmem>>, vector<8x32xf32>
    %35 = arith.truncf %34 : vector<8x32xf32> to vector<8x32xbf16>
    %c3 = arith.constant 3 : index
    %c0_20 = arith.constant 0 : index
    %c0_21 = arith.constant 0 : index
    %36 = vector.load %arg3[%c3, %c0_20, %c0_21] : memref<8x32x32xbf16, #tpu.memory_space<vmem>>, vector<1x32x32xbf16>
    %37 = vector.shape_cast %36 : vector<1x32x32xbf16> to vector<32x32xbf16>
    %cst_22 = arith.constant dense<0.000000e+00> : vector<8x32xf32>
    %38 = tpu.matmul %35, %37, %cst_22 {dimension_numbers = #tpu.dot_dimension_numbers<[1], [0], [0], [1], [0, 0, 1, 1], [], []>} : vector<8x32xbf16>, vector<32x32xbf16>, vector<8x32xf32> -> vector<8x32xf32>
    %39 = arith.addf %31, %38 : vector<8x32xf32>
    %c4_i32 = arith.constant 4 : i32
    %40 = arith.addi %1, %c4_i32 : i32
    %41 = arith.index_cast %40 : i32 to index
    %c0_23 = arith.constant 0 : index
    %42 = vector.load %arg8[%41, %c0_23] : memref<24x32xf32, #tpu.memory_space<vmem>>, vector<8x32xf32>
    %43 = arith.truncf %42 : vector<8x32xf32> to vector<8x32xbf16>
    %c4_24 = arith.constant 4 : index
    %c0_25 = arith.constant 0 : index
    %c0_26 = arith.constant 0 : index
    %44 = vector.load %arg3[%c4_24, %c0_25, %c0_26] : memref<8x32x32xbf16, #tpu.memory_space<vmem>>, vector<1x32x32xbf16>
    %45 = vector.shape_cast %44 : vector<1x32x32xbf16> to vector<32x32xbf16>
    %cst_27 = arith.constant dense<0.000000e+00> : vector<8x32xf32>
    %46 = tpu.matmul %43, %45, %cst_27 {dimension_numbers = #tpu.dot_dimension_numbers<[1], [0], [0], [1], [0, 0, 1, 1], [], []>} : vector<8x32xbf16>, vector<32x32xbf16>, vector<8x32xf32> -> vector<8x32xf32>
    %47 = arith.addf %39, %46 : vector<8x32xf32>
    %c5_i32 = arith.constant 5 : i32
    %48 = arith.addi %1, %c5_i32 : i32
    %49 = arith.index_cast %48 : i32 to index
    %c0_28 = arith.constant 0 : index
    %50 = vector.load %arg8[%49, %c0_28] : memref<24x32xf32, #tpu.memory_space<vmem>>, vector<8x32xf32>
    %51 = arith.truncf %50 : vector<8x32xf32> to vector<8x32xbf16>
    %c5 = arith.constant 5 : index
    %c0_29 = arith.constant 0 : index
    %c0_30 = arith.constant 0 : index
    %52 = vector.load %arg3[%c5, %c0_29, %c0_30] : memref<8x32x32xbf16, #tpu.memory_space<vmem>>, vector<1x32x32xbf16>
    %53 = vector.shape_cast %52 : vector<1x32x32xbf16> to vector<32x32xbf16>
    %cst_31 = arith.constant dense<0.000000e+00> : vector<8x32xf32>
    %54 = tpu.matmul %51, %53, %cst_31 {dimension_numbers = #tpu.dot_dimension_numbers<[1], [0], [0], [1], [0, 0, 1, 1], [], []>} : vector<8x32xbf16>, vector<32x32xbf16>, vector<8x32xf32> -> vector<8x32xf32>
    %55 = arith.addf %47, %54 : vector<8x32xf32>
    %c6_i32 = arith.constant 6 : i32
    %56 = arith.addi %1, %c6_i32 : i32
    %57 = arith.index_cast %56 : i32 to index
    %c0_32 = arith.constant 0 : index
    %58 = vector.load %arg8[%57, %c0_32] : memref<24x32xf32, #tpu.memory_space<vmem>>, vector<8x32xf32>
    %59 = arith.truncf %58 : vector<8x32xf32> to vector<8x32xbf16>
    %c6 = arith.constant 6 : index
    %c0_33 = arith.constant 0 : index
    %c0_34 = arith.constant 0 : index
    %60 = vector.load %arg3[%c6, %c0_33, %c0_34] : memref<8x32x32xbf16, #tpu.memory_space<vmem>>, vector<1x32x32xbf16>
    %61 = vector.shape_cast %60 : vector<1x32x32xbf16> to vector<32x32xbf16>
    %cst_35 = arith.constant dense<0.000000e+00> : vector<8x32xf32>
    %62 = tpu.matmul %59, %61, %cst_35 {dimension_numbers = #tpu.dot_dimension_numbers<[1], [0], [0], [1], [0, 0, 1, 1], [], []>} : vector<8x32xbf16>, vector<32x32xbf16>, vector<8x32xf32> -> vector<8x32xf32>
    %63 = arith.addf %55, %62 : vector<8x32xf32>
    %c7_i32 = arith.constant 7 : i32
    %64 = arith.addi %1, %c7_i32 : i32
    %65 = arith.index_cast %64 : i32 to index
    %c0_36 = arith.constant 0 : index
    %66 = vector.load %arg8[%65, %c0_36] : memref<24x32xf32, #tpu.memory_space<vmem>>, vector<8x32xf32>
    %67 = arith.truncf %66 : vector<8x32xf32> to vector<8x32xbf16>
    %c7 = arith.constant 7 : index
    %c0_37 = arith.constant 0 : index
    %c0_38 = arith.constant 0 : index
    %68 = vector.load %arg3[%c7, %c0_37, %c0_38] : memref<8x32x32xbf16, #tpu.memory_space<vmem>>, vector<1x32x32xbf16>
    %69 = vector.shape_cast %68 : vector<1x32x32xbf16> to vector<32x32xbf16>
    %cst_39 = arith.constant dense<0.000000e+00> : vector<8x32xf32>
    %70 = tpu.matmul %67, %69, %cst_39 {dimension_numbers = #tpu.dot_dimension_numbers<[1], [0], [0], [1], [0, 0, 1, 1], [], []>} : vector<8x32xbf16>, vector<32x32xbf16>, vector<8x32xf32> -> vector<8x32xf32>
    %71 = arith.addf %63, %70 : vector<8x32xf32>
    %c0_40 = arith.constant 0 : index
    %c0_41 = arith.constant 0 : index
    %72 = vector.load %arg4[%c0_40, %c0_41] : memref<1x32xf32, #tpu.memory_space<vmem>>, vector<1x32xf32>
    %73 = vector.broadcast %72 : vector<1x32xf32> to vector<8x32xf32>
    %74 = arith.addf %71, %73 : vector<8x32xf32>
    %cst_42 = arith.constant 5.000000e-01 : f32
    %75 = vector.broadcast %cst_42 : f32 to vector<8x32xf32>
    %76 = arith.mulf %75, %74 : vector<8x32xf32>
    %cst_43 = arith.constant 0.707106769 : f32
    %77 = vector.broadcast %cst_43 : f32 to vector<8x32xf32>
    %78 = arith.mulf %74, %77 : vector<8x32xf32>
    %79 = math.erf %78 : vector<8x32xf32>
    %cst_44 = arith.constant 1.000000e+00 : f32
    %80 = vector.broadcast %cst_44 : f32 to vector<8x32xf32>
    %81 = arith.addf %80, %79 : vector<8x32xf32>
    %82 = arith.mulf %76, %81 : vector<8x32xf32>
    %c0_45 = arith.constant 0 : index
    %83 = arith.index_cast %1 : i32 to index
    %c0_46 = arith.constant 0 : index
    %84 = vector.load %arg2[%c0_45, %83, %c0_46] : memref<1x16x32xf32, #tpu.memory_space<vmem>>, vector<1x8x32xf32>
    %85 = vector.shape_cast %84 : vector<1x8x32xf32> to vector<8x32xf32>
    %86 = arith.addf %85, %82 : vector<8x32xf32>
    %c0_47 = arith.constant 0 : index
    %c0_48 = arith.constant 0 : index
    %87 = vector.load %arg5[%c0_47, %c0_48] : memref<1x32xf32, #tpu.memory_space<vmem>>, vector<1x32xf32>
    %c0_49 = arith.constant 0 : index
    %c0_50 = arith.constant 0 : index
    %88 = vector.load %arg6[%c0_49, %c0_50] : memref<1x32xf32, #tpu.memory_space<vmem>>, vector<1x32xf32>
    %cst_51 = arith.constant dense<0.000000e+00> : vector<8xf32>
    %89 = vector.multi_reduction <add>, %86, %cst_51 [1] : vector<8x32xf32> to vector<8xf32>
    %90 = vector.shape_cast %89 : vector<8xf32> to vector<8x1xf32>
    %cst_52 = arith.constant 3.200000e+01 : f32
    %91 = vector.broadcast %cst_52 : f32 to vector<8x1xf32>
    %92 = arith.divf %90, %91 : vector<8x1xf32>
    %93 = vector.broadcast %92 : vector<8x1xf32> to vector<8x32xf32>
    %94 = arith.subf %86, %93 : vector<8x32xf32>
    %95 = vector.broadcast %92 : vector<8x1xf32> to vector<8x32xf32>
    %96 = arith.subf %86, %95 : vector<8x32xf32>
    %97 = arith.mulf %94, %96 : vector<8x32xf32>
    %cst_53 = arith.constant dense<0.000000e+00> : vector<8xf32>
    %98 = vector.multi_reduction <add>, %97, %cst_53 [1] : vector<8x32xf32> to vector<8xf32>
    %99 = vector.shape_cast %98 : vector<8xf32> to vector<8x1xf32>
    %cst_54 = arith.constant 3.200000e+01 : f32
    %100 = vector.broadcast %cst_54 : f32 to vector<8x1xf32>
    %101 = arith.divf %99, %100 : vector<8x1xf32>
    %102 = vector.broadcast %92 : vector<8x1xf32> to vector<8x32xf32>
    %103 = arith.subf %86, %102 : vector<8x32xf32>
    %cst_55 = arith.constant 9.99999974E-6 : f32
    %104 = vector.broadcast %cst_55 : f32 to vector<8x1xf32>
    %105 = arith.addf %101, %104 : vector<8x1xf32>
    %106 = math.rsqrt %105 : vector<8x1xf32>
    %107 = vector.broadcast %106 : vector<8x1xf32> to vector<8x32xf32>
    %108 = arith.mulf %103, %107 : vector<8x32xf32>
    %109 = vector.broadcast %87 : vector<1x32xf32> to vector<8x32xf32>
    %110 = arith.mulf %108, %109 : vector<8x32xf32>
    %111 = vector.broadcast %88 : vector<1x32xf32> to vector<8x32xf32>
    %112 = arith.addf %110, %111 : vector<8x32xf32>
    %113 = arith.truncf %112 : vector<8x32xf32> to vector<8x32xbf16>
    %c0_56 = arith.constant 0 : index
    %c0_57 = arith.constant 0 : index
    %c0_58 = arith.constant 0 : index
    %114 = vector.load %arg7[%c0_56, %c0_57, %c0_58] : memref<1x8x32xbf16, #tpu.memory_space<vmem>>, vector<1x8x32xbf16>
    %115 = vector.shape_cast %114 : vector<1x8x32xbf16> to vector<8x32xbf16>
    %116 = vector.shape_cast %113 : vector<8x32xbf16> to vector<1x8x32xbf16>
    tpu.vector_store %arg7[%c0_56, %c0_57, %c0_58], %116 {strides = array<i32>} : memref<1x8x32xbf16, #tpu.memory_space<vmem>>, vector<1x8x32xbf16>,
    return
  }
  func.func @transform_0(%arg0: i32, %arg1: i32) -> (i32, i32, i32) {
    %c0_i32 = arith.constant 0 : i32
    %c0_i32_0 = arith.constant 0 : i32
    %c0_i32_1 = arith.constant 0 : i32
    return %arg0, %c0_i32, %c0_i32_0 : i32, i32, i32
  }
  func.func @transform_1(%arg0: i32, %arg1: i32) -> (i32, i32, i32) {
    %c0_i32 = arith.constant 0 : i32
    %c0_i32_0 = arith.constant 0 : i32
    %c0_i32_1 = arith.constant 0 : i32
    %c0_i32_2 = arith.constant 0 : i32
    return %c0_i32, %c0_i32_0, %c0_i32_1 : i32, i32, i32
  }
  func.func @transform_2(%arg0: i32, %arg1: i32) -> (i32, i32) {
    %c0_i32 = arith.constant 0 : i32
    %c0_i32_0 = arith.constant 0 : i32
    %c0_i32_1 = arith.constant 0 : i32
    return %c0_i32, %c0_i32_0 : i32, i32
  }
  func.func @transform_3(%arg0: i32, %arg1: i32) -> (i32, i32) {
    %c0_i32 = arith.constant 0 : i32
    %c0_i32_0 = arith.constant 0 : i32
    %c0_i32_1 = arith.constant 0 : i32
    return %c0_i32, %c0_i32_0 : i32, i32
  }
  func.func @transform_4(%arg0: i32, %arg1: i32) -> (i32, i32) {
    %c0_i32 = arith.constant 0 : i32
    %c0_i32_0 = arith.constant 0 : i32
    %c0_i32_1 = arith.constant 0 : i32
    return %c0_i32, %c0_i32_0 : i32, i32
  }
  func.func @transform_5(%arg0: i32, %arg1: i32) -> (i32, i32, i32) {
    %c0_i32 = arith.constant 0 : i32
    %c0_i32_0 = arith.constant 0 : i32
    return %arg0, %arg1, %c0_i32 : i32, i32, i32
  }
}

</mosaic_0001>

<bundles_post_ra>
// kernel: tpu_custom_call.1
= control target key start
LH: loop header
LB: loop body
LE: loop exit
PB: predicated region body
PF: predicated region fallthrough
CT: control target
= control target key end

     0   :  { %s1516_s0 = inlined_call_operand.hbm [shape: f32[2,16,32], index: 0, kind: input, shape index: {}]   ;;  %s1517_s1 = inlined_call_operand.hbm [shape: bf16[8,32,32], index: 1, kind: input, shape index: {}]   ;;  %s1518_s2 = inlined_call_operand.vmem [shape: f32[1,32], index: 2, kind: input, shape index: {}]   ;;  %s1519_s3 = inlined_call_operand.vmem [shape: f32[1,32], index: 3, kind: input, shape index: {}]   ;;  %s1520_s4 = inlined_call_operand.vmem [shape: f32[1,32], index: 4, kind: input, shape index: {}]   ;;  %s1521_s5 = inlined_call_operand.hbm [shape: bf16[2,16,32], index: 5, kind: output, shape index: {}]  }
   0x1   :  { %1530 = sst [smem:[#allocation18_spill]] %s1517_s1 }
   0x2   :  { %1531 = sst [smem:[#allocation19_spill]] %s1519_s3 }
   0x3   :  { %1532 = sst [smem:[#allocation20_spill]] %s1520_s4 }
   0x4   :  { %1533 = sst [smem:[#allocation21_spill]] %s1521_s5 }
   0x5   :  { %10 = vsyncpa [#allocation4], 0 }
   0x6   :  { %12 = vsyncpa [#allocation4 + $0x1], 0 }
   0x7   :  { %13 = vsyncpa [#allocation7], 0 }
   0x8   :  { %14 = vsyncpa [#allocation5], 0 }
   0x9   :  { %16 = vsyncpa [#allocation5 + $0x1], 0  ;;  %s1291_s18 = smov 0   ;;  %s1293_s19 = smov 0  }
   0xa   :  { %s1295_s20 = smov 0   ;;  %s1297_s21 = smov 0  }
   0xb   :  { %s1299_s22 = smov 0   ;;  %s1301_s23 = smov 0  }
   0xc   :  { %s1303_s24 = smov 0   ;;  %s1305_s25 = smov 0  }
   0xd   :  { %s1307_s26 = smov 0   ;;  %s1309_s27 = smov 0  }
   0xe   :  { %s1311_s28 = smov 0  }
   0xf LB: > { %1534 = sst [smem:[#allocation12_spill]] %s1212_s18  ;;  %s816_s29 = sadd.s32 4294967295, %s1252_s28   ;;  %s1252_s28 = sphi %s1311_s28, %s22_s28   ;;  %s1248_s27 = sphi %s1309_s27, %s1565_s27   ;;  %s1244_s26 = sphi %s1307_s26, %s1556_s26   ;;  %s1240_s25 = sphi %s1305_s25, %s1564_s25   ;;  %s1236_s24 = sphi %s1303_s24, %s1555_s24   ;;  %s1232_s23 = sphi %s1301_s23, %s1563_s23   ;;  %s1228_s22 = sphi %s1299_s22, %s1562_s22   ;;  %s1224_s21 = sphi %s1297_s21, %s1561_s21   ;;  %s1220_s20 = sphi %s1295_s20, %s1560_s20   ;;  %s1216_s19 = sphi %s1293_s19, %s1559_s19   ;;  %s1212_s18 = sphi %s1291_s18, %s1558_s18  }
  0x10   : > { %1535 = sst [smem:[#allocation13_spill]] %s1244_s26  ;;  %s817_s30 = sadd.s32 4294967294, %s1252_s28  }
  0x11   : > { %p54_p0 = scmp.ne.s32.totalorder %s1228_s22, %s1224_s21  ;;  %p1347_p1 = scmp.eq.s32.totalorder %s816_s29, 0 }
  0x12   : > { %p163_p2 = scmp.ne.s32.totalorder %s1220_s20, %s1216_s19  ;;  %p164_p3 = scmp.eq.s32.totalorder %s816_s29, 3 }
  0x13   : > { %p1355_p4 = por %p1347_p1, %p54_p0  ;;  %p169_p5 = scmp.ne.s32.totalorder %s1216_s19, %s1212_s18 }
  0x14   : > { %p1361_p6 = por %p164_p3, %p163_p2  ;;  %p170_p7 = scmp.eq.s32.totalorder %s817_s30, 3 }
  0x15   : > { %p818_p8 = scmp.ge.s32.totalorder %s1252_s28, 1  ;;  %p177_p9 = scmp.lt.s32.totalorder %s1252_s28, 5 }
  0x16   : > { %s1538_s8 = scalar_select %p1361_p6, 1, 0 }
  0x17   : > { %p1367_p10 = por %p170_p7, %p169_p5  ;;  %p1371_p11 = pnand %p818_p8, %p177_p9 }
  0x18   : > { %1539 = sst [smem:[#allocation14_spill]] %s1538_s8  ;;  %s1254_s14 = smov [#allocation6]  }
  0x19   : > { %s1540_s9 = scalar_select %p1367_p10, 1, 0 }
  0x1a   : > { %s1543_s1 = sld [smem:[#allocation18_spill]]  ;;  %p946_p12 = pneg %p1371_p11 }
  0x1b   : > { %1541 = sst [smem:[#allocation15_spill]] %s1540_s9  ;;  %s190_s15 = sshll.u32 %s1254_s14, 4  ;;  %s191_s15 = int_to_ptr.vmem [resolvable:$true] %s190_s15 }
  0x1c   : > { %p947_p13 = pnand %p946_p12, %p1347_p1  ;;  %s1255_s16 = smov 64  }
  0x1d   : > { %s1256_s17 = smov 4   ;;  %s31_s21 = sadd.s32 1, %s1244_s26 }
  0x1e   : > { %s34_s29 = sadd.s32 1, %s1248_s27  ;;  %p32_p0 = scmp.ge.s32.totalorder %s31_s21, 2 }
  0x1f   : > { %s41_s30 = sadd.s32 1, %s1232_s23  ;;  %p48_p2 = scmp.ne.s32.totalorder %s1232_s23, %s1228_s22 }
  0x20   : > { %s188_s13 = sshll.u32 %s1543_s1, 4  ;;  %p49_p3 = scmp.eq.s32.totalorder %s1252_s28, 0  ;;  %s189_s13 = int_to_ptr.hbm [resolvable:$true] %s188_s13 }
  0x21   : > { %949 = dma.hbm_to_vmem [thread:$0]  (!%p947_p13), %s189_s13, 2048, %s191_s15, [#allocation7], %s1255_s16, %s1255_s16, %s1256_s17  }
  0x22   : > { %s1567_s21 = smov (%p32_p0, %s31_s21), 0  ;;  %s1569_s29 = smov (!%p32_p0, %s34_s29), %s1248_s27 }
  0x23   : > { %1544 = sst [smem:[#allocation16_spill]] %s1567_s21  ;;  %p1391_p5 = por %p49_p3, %p48_p2 }
  0x24   : > { %s149_s12 = ssub.s32 %s1244_s26, %s1567_s21  ;;  %p36_p7 = scmp.ge.s32.totalorder %s1569_s29, 2 }
  0x25   : > { %s153_s13 = sadd.s32 1, %s1220_s20  ;;  %p959_p8 = scmp.lt.s32.totalorder %s1252_s28, 4 }
  0x26   : > { %s213_s14 = sand.u32 1, %s1232_s23   ;;  %s1571_s29 = smov (%p36_p7, %s1569_s29), 0 }
  0x27   : > { %1546 = sst [smem:[#allocation17_spill]] %s1571_s29  ;;  %s821_s15 = sshll.u32 %s213_s14, 4 }
  0x28   : > { %s38_s16 = ssub.s32 %s1248_s27, %s1571_s29  ;;  %s921_s1 = sshll.u32 %s1248_s27, 4 }
  0x29   : > { %p39_p9 = scmp.eq.s32.totalorder %s38_s16, 0  ;;  %s150_s17 = sor.u32 %s149_s12, %s38_s16 }
  0x2a   : > { %p151_p12 = scmp.eq.s32.totalorder %s150_s17, 0  ;;  %s222_s8 = scalar_lea.hbm %s1516_s0, %s921_s1 }
  0x2b   : > { %s1406_s9 = scalar_select %p39_p9, %s1232_s23, %s41_s30  }
  0x2c   : > { %s1409_s18 = scalar_select %p151_p12, %s1220_s20, %s153_s13  }
  0x2d   : > { %s217_s5 = scalar_lea.vmem [#allocation3], %s821_s15  ;;  %s223_s3 = sshll.u32 %s222_s8, 4  ;;  %s224_s3 = int_to_ptr.hbm [resolvable:$true] %s223_s3 }
  0x2e   : > { %s225_s4 = sshll.u32 %s217_s5, 4  ;;  %p951_p13 = pnand %p959_p8, %p1391_p5  ;;  %s226_s4 = int_to_ptr.vmem [resolvable:$true] %s225_s4 }
  0x2f   : > { %s214_s29 = scalar_lea.sflag [#allocation4], %s213_s14  ;;  %s1257_s12 = smov 128  }
  0x30   : > { %s1258_s16 = smov 8   ;;  %237 = sbr.rel (%p1371_p11) target bundleno = 553 (0x229), region = 40 }
  0x31   : > { %953 = dma.hbm_to_vmem [thread:$0]  (!%p951_p13), %s224_s3, 256, %s226_s4, %s214_s29, %s1257_s12, %s1257_s12, %s1258_s16  }
  0x32   : > { %s239_s30 = sand.u32 (!%p1371_p11), 1, %s1228_s22  }
  0x33   : > { %s825_s26 = sshll.u32 (!%p1371_p11), %s239_s30, 4  ;;  %s240_s1 = scalar_lea.sflag (!%p1371_p11), [#allocation4], %s239_s30 }
  0x34   : > { %s1421_s21 = scalar_lea.vmem (!%p1371_p11), [#allocation3], %s825_s26 }
  0x35   : > { %1199 = dma.done.wait (%p1355_p4), %s240_s1, 256  }
  0x36   : > { %1201 = vsyncadd (%p1355_p4), %s240_s1, 4294967040 }
  0x37   : > { %1203 = dma.done.wait (%p1347_p1), [#allocation7], 2048  }
  0x38   : > { %1205 = vsyncadd (%p1347_p1), [#allocation7], 4294965248  ;;  %vm278_vm0 = vcmask 261120   ;;  %v1259_v0 = vmov 0.0   ;;  %v925_v1 = vld [vmem:[#allocation6 + $0x18] sm:$0xff]  ;;  %v923_v2 = vld [vmem:[#allocation6 + $0x8] sm:$0xff] }
  0x39   : > { %279 = vst.msk [vmem:[#allocation2] sm:$0xff] %vm278_vm0, %v1259_v0  ;;  %v927_v3 = vld [vmem:[#allocation6 + $0x28] sm:$0xff]  ;;  %v929_v4 = vld [vmem:[#allocation6 + $0x38] sm:$0xff]  ;;  %323 = vmatpush.bf16.msra.mxu0 %v925_v1  ;;  %351 = vmatpush.bf16.msra.mxu1 %v923_v2  ;;  %v924_v5 = vld [vmem:[#allocation6 + $0x10] sm:$0xff]  ;;  %s828_s3 = sshll.u32 %s1236_s24, 3  ;;  %s917_s8 = sshll.u32 %s1240_s25, 1 }
  0x3a   : > { %280 = vst.msk [vmem:[#allocation2 + $0x8] sm:$0xff] %vm278_vm0, %v1259_v0  ;;  %v922_v6 = vld [vmem:[#allocation6] sm:$0xff]  ;;  %388 = vmatpush.bf16.msra.mxu2 %v927_v3  ;;  %426 = vmatpush.bf16.msra.mxu3 %v929_v4  ;;  %v928_v9 = vld [vmem:[#allocation6 + $0x30] sm:$0xff]  ;;  %v283_v10 = vld [vmem:[%s1421_s21 + $0x8] sm:$0xff]  ;;  %s286_s4 = scalar_lea.vmem [#allocation2], %s828_s3  ;;  %s635_s7 = scalar_lea.vmem %s1421_s21, %s828_s3 [#allocation3]  ;;  %vm678_vm9 = vcmask 257024  }
  0x3b   : > { %281 = vst.msk [vmem:[#allocation2 + $0x10] sm:$0xff] %vm278_vm0, %v1259_v0  ;;  %v282_v7 = vld [vmem:[%s1421_s21] sm:$0xff]  ;;  %v935_v11 = vld [vmem:[#allocation6 + $0x68] sm:$0xff]  ;;  %v937_v13 = vld [vmem:[#allocation6 + $0x78] sm:$0xff]  ;;  %s273_s10 = sand.u32 1, %s1216_s19   ;;  %s691_s29 = sadd.s32 %s1236_s24, %s917_s8 }
  0x3c   : > { %v926_v8 = vld [vmem:[#allocation6 + $0x20] sm:$0xff]  ;;  %284 = vst.msk [vmem:[#allocation2 + $0x4] sm:$0xff] %vm278_vm0, %v282_v7  ;;  %v931_v12 = vld [vmem:[#allocation6 + $0x48] sm:$0xff]  ;;  %v933_v14 = vld [vmem:[#allocation6 + $0x58] sm:$0xff]  ;;  %s827_s11 = sshll.u32 %s273_s10, 2  ;;  %s918_s13 = sshll.u32 %s691_s29, 2 }
  0x3d   : > { %285 = vst.msk [vmem:[#allocation2 + $0xc] sm:$0xff] %vm278_vm0, %v283_v10  ;;  %324 = vmatpush.bf16.msra.mxu0 %v924_v5  ;;  %352 = vmatpush.bf16.msra.mxu1 %v922_v6  ;;  %v934_v15 = vld [vmem:[#allocation6 + $0x60] sm:$0xff]  ;;  %v936_v17 = vld [vmem:[#allocation6 + $0x70] sm:$0xff]  ;;  %v1057_v53 = vld [vmem:[%s1518_s2] ss:$0 sm:$0xff]  ;;  %s1547_s17 = sld [smem:[#allocation19_spill]] }
  0x3e   : > { %389 = vmatpush.bf16.msra.mxu2 %v926_v8  ;;  %427 = vmatpush.bf16.msra.mxu3 %v928_v9  ;;  %v930_v16 = vld [vmem:[#allocation6 + $0x40] sm:$0xff]  ;;  %v932_v18 = vld [vmem:[#allocation6 + $0x50] sm:$0xff]  ;;  %s1548_s30 = sld [smem:[#allocation20_spill]] }
  0x3f   : > { %s1549_s24 = sld [smem:[#allocation21_spill]] }
  0x41   : > { %464 = vmatpush.bf16.msrb.mxu0 %v931_v12  ;;  %502 = vmatpush.bf16.msrb.mxu1 %v933_v14 }
  0x42   : > { %540 = vmatpush.bf16.msrb.mxu2 %v935_v11  ;;  %578 = vmatpush.bf16.msrb.mxu3 %v937_v13 }
  0x44   : > { %v830_v19 = vld [vmem:[%s286_s4 + $0x1] sm:$0xff] }
  0x45   : > { %v287_v20 = vld [vmem:[%s286_s4] sm:$0xff]  ;;  %v296_v22 = vpack.c.bf16 %v830_v19, %v830_v19  ;;  %465 = vmatpush.bf16.msrb.mxu0 %v930_v16  ;;  %503 = vmatpush.bf16.msrb.mxu1 %v932_v18  ;;  %s1550_s1 = smov %s1549_s24  ;;  %s693_s21 = scalar_lea.hbm %s1549_s24, %s918_s13 }
  0x46   : > { %v850_v21 = vld [vmem:[%s286_s4 + $0x2] sm:$0xff]  ;;  %v288_v23 = vpack.c.bf16 %v287_v20, %v287_v20  ;;  %541 = vmatpush.bf16.msrb.mxu2 %v934_v15  ;;  %579 = vmatpush.bf16.msrb.mxu3 %v936_v17  ;;  %s697_s6 = sshll.u32 %s693_s21, 4  ;;  %s698_s6 = int_to_ptr.hbm [resolvable:$true] %s697_s6 }
  0x47   : > { %v361_v24 = vpack.c.bf16 %v850_v21, %v850_v21  ;;  %v861_v25 = vld [vmem:[%s286_s4 + $0x3] sm:$0xff]  ;;  %839 = vmatmul.msk.bf16.vlgmr.msra.gmra.mxu0 %vm278_vm0, %v296_v22  ;;  %s1140_s8 = sshra.s32 %s698_s6, 4  ;;  %s1141_s8 = int_to_ptr.hbm [resolvable:$true] %s1140_s8 }
  0x48   : > { %v399_v26 = vpack.c.bf16 %v861_v25, %v861_v25  ;;  %848 = vmatmul.msk.bf16.vlgmr.msra.gmra.mxu1 %vm278_vm0, %v288_v23  ;;  %v872_v27 = vld [vmem:[%s286_s4 + $0x4] sm:$0xff]  ;;  %s1142_s29 = scalar_lea.hbm %s1141_s8, 4  ;;  %p1147_p0 = scmp.lt.s32.totalorder %s1141_s8, %s1550_s1 }
  0x49   : > { %859 = vmatmul.msk.bf16.vlgmr.msra.gmra.mxu2 %vm278_vm0, %v361_v24  ;;  %v883_v28 = vld [vmem:[%s286_s4 + $0x5] sm:$0xff]  ;;  %v437_v31 = vpack.c.bf16 %v872_v27, %v872_v27  ;;  %p1143_p1 = scmp.ne.s32.totalorder %s1141_s8, %s1142_s29 }
  0x4a   : > { %870 = vmatmul.msk.bf16.vlgmr.msra.gmra.mxu3 %vm278_vm0, %v399_v26  ;;  %v894_v29 = vld [vmem:[%s286_s4 + $0x6] sm:$0xff]  ;;  %v475_v32 = vpack.c.bf16 %v883_v28, %v883_v28 }
  0x4b   : > { %v905_v30 = vld [vmem:[%s286_s4 + $0x7] sm:$0xff]  ;;  %v513_v33 = vpack.c.bf16 %v894_v29, %v894_v29  ;;  %s275_s4 = scalar_lea.vmem [#allocation8], %s827_s11  ;;  %p1144_p4 = pnand %p1143_p1, %p1361_p6 }
  0x4c   : > { %v551_v34 = vpack.c.bf16 %v905_v30, %v905_v30  ;;  %s695_s5 = sshll.u32 %s275_s4, 4  ;;  %s1146_s11 = scalar_lea.hbm %s1550_s1, 16  ;;  %s696_s5 = int_to_ptr.vmem [resolvable:$true] %s695_s5 }
  0x4d   : > { %p1145_p11 = pneg %p1144_p4  ;;  %p1148_p2 = scmp.lt.s32.totalorder %s1146_s11, %s1142_s29 }
  0x4f   : > { %p1149_p3 = por %p1148_p2, %p1147_p0 }
  0x51   : > { %p1150_p5 = pnand %p1149_p3, %p1145_p11 }
  0x57   : > { %881 = vmatmul.msk.bf16.vlgmr.msrb.gmra.mxu0 %vm278_vm0, %v437_v31 }
  0x58   : > { %892 = vmatmul.msk.bf16.vlgmr.msrb.gmra.mxu1 %vm278_vm0, %v475_v32 }
  0x59   : > { %903 = vmatmul.msk.bf16.vlgmr.msrb.gmra.mxu2 %vm278_vm0, %v513_v33 }
  0x5a   : > { %914 = vmatmul.msk.bf16.vlgmr.msrb.gmra.mxu3 %vm278_vm0, %v551_v34  ;;  %v636_v34 = vld [vmem:[%s635_s7] sm:$0xff]  ;;  %s681_s7 = scalar_lea.sflag [#allocation5], %s273_s10 }
  0xc4   : > { %v326_v35 = vpop.f32.mrf.mxu0 }
  0xc5   : > { %v354_v36 = vpop.f32.mrf.mxu1 }
  0xc6   : > { %v355_v41 = vadd.f32 %v354_v36, %v326_v35 }
  0xcc   : > { %v391_v37 = vpop.f32.mrf.mxu2  ;;  %v328_v39 = vpop.f32.mrf.mxu0 }
  0xcd   : > { %v429_v38 = vpop.f32.mrf.mxu3  ;;  %v356_v40 = vpop.f32.mrf.mxu1  ;;  %v395_v42 = vadd.f32 %v391_v37, %v355_v41 }
  0xcf   : > { %v433_v45 = vadd.f32 %v429_v38, %v395_v42  ;;  %v1260_v38 = vmov 32.0  }
  0xd4   : > { %v393_v43 = vpop.f32.mrf.mxu2  ;;  %v467_v46 = vpop.f32.mrf.mxu0 }
  0xd5   : > { %v431_v44 = vpop.f32.mrf.mxu3  ;;  %v505_v47 = vpop.f32.mrf.mxu1  ;;  %v471_v48 = vadd.f32 %v467_v46, %v433_v45 }
  0xd7   : > { %v509_v49 = vadd.f32 %v505_v47, %v471_v48 }
  0xdc   : > { %v543_v50 = vpop.f32.mrf.mxu2  ;;  %v469_v54 = vpop.f32.mrf.mxu0 }
  0xdd   : > { %v581_v51 = vpop.f32.mrf.mxu3  ;;  %v547_v52 = vadd.f32 %v543_v50, %v509_v49  ;;  %v507_v55 = vpop.f32.mrf.mxu1 }
  0xdf   : > { %v585_v56 = vadd.f32 %v581_v51, %v547_v52 }
  0xe1   : > { %v590_v57 = vadd.f32 %v1057_v53, %v585_v56 }
  0xe3   : > { %v592_v58 = vmul.f32 0.70710677, %v590_v57  ;;  %v591_v32 = vmul.f32 0.5, %v590_v57 }
  0xe4   : > { %v545_v59 = vpop.f32.mrf.mxu2 }
  0xe5   : > { %v583_v60 = vpop.f32.mrf.mxu3  ;;  %v593_v61 = vmul.f32 %v592_v58, %v592_v58  ;;  %v1058_v59 = vld [vmem:[%s1547_s17] ss:$0 sm:$0xff] }
  0xe7   : > { %v594_v62 = vmin.f32 %v593_v61, 16.0  ;;  %v1059_v61 = vld [vmem:[%s1548_s30] ss:$0 sm:$0xff] }
  0xe9   : > { %v595_v63 = vmul.f32 2.1237322e-06, %v594_v62  ;;  %v606_v0 = vmul.f32 3.8918573e-05, %v594_v62 }
  0xeb   : > { %v596_v1 = vadd.f32 0.00028619796, %v595_v63  ;;  %v607_v2 = vadd.f32 0.001143296, %v606_v0 }
  0xed   : > { %v597_v3 = vmul.f32 %v596_v1, %v594_v62  ;;  %v608_v4 = vmul.f32 %v607_v2, %v594_v62 }
  0xef   : > { %v609_v5 = vadd.f32 0.014752088, %v608_v4  ;;  %v598_v6 = vadd.f32 0.0036580483, %v597_v3 }
  0xf1   : > { %v610_v7 = vmul.f32 %v609_v5, %v594_v62  ;;  %v599_v9 = vmul.f32 %v598_v6, %v594_v62 }
  0xf3   : > { %v611_v8 = vadd.f32 0.112945676, %v610_v7  ;;  %v600_v12 = vadd.f32 0.05243302, %v599_v9 }
  0xf5   : > { %v612_v10 = vmul.f32 %v611_v8, %v594_v62  ;;  %v601_v15 = vmul.f32 %v600_v12, %v594_v62 }
  0xf7   : > { %v613_v11 = vadd.f32 0.4994258, %v612_v10  ;;  %v602_v16 = vadd.f32 0.18741608, %v601_v15 }
  0xf9   : > { %v614_v13 = vmul.f32 %v613_v11, %v594_v62  ;;  %v603_v18 = vmul.f32 %v602_v16, %v594_v62 }
  0xfb   : > { %v615_v14 = vadd.f32 1.0, %v614_v13  ;;  %v604_v22 = vadd.f32 1.1283791, %v603_v18 }
  0xfd   : > { %1060 = vrcp.f32 %v615_v14  ;;  %v627_v21 = vand.u32 2147483648, %v615_v14  ;;  %v625_v24 = vand.u32 2147483647, %v615_v14  ;;  %vm621_vm2 = vweird.f32 %v615_v14 }
  0xfe   : > { %v605_v27 = vmul.f32 %v604_v22, %v592_v58  ;;  %1062 = vrcp.f32 %v1260_v38 }
  0xff   : > { %v628_v26 = vor.u32 1.1754944e-38, %v627_v21  ;;  %vm626_vm4 = vcmp.eq.f32.partialorder %v625_v24, 8.507059e+37 }
 0x103   : > { %v1061_v17 = vpop.eup %1060 }
 0x104   : > { %v617_v19 = vmul.f32 %v1061_v17, %v615_v14  ;;  %vm622_vm1 = vweird.f32 %v1061_v17  ;;  %v1063_v39 = vpop.eup %1062 }
 0x105   : > { %vm623_vm3 = vmor %vm621_vm2, %vm622_vm1  ;;  %v644_v40 = vmul.f32 32.0, %v1063_v39  ;;  %vm648_vm5 = vweird.f32 %v1063_v39 }
 0x106   : > { %v618_v20 = vsub.f32 1.0, %v617_v19 }
 0x107   : > { %v645_v41 = vsub.f32 1.0, %v644_v40 }
 0x108   : > { %v619_v23 = vmul.f32 %v1061_v17, %v618_v20 }
 0x109   : > { %v646_v42 = vmul.f32 %v1063_v39, %v645_v41 }
 0x10a   : > { %v620_v25 = vadd.f32 %v1061_v17, %v619_v23 }
 0x10b   : > { %v647_v43 = vadd.f32 %v1063_v39, %v646_v42 }
 0x10c   : > { %v624_v28 = vsel %vm623_vm3, %v1061_v17, %v620_v25 }
 0x10d   : > { %v629_v29 = vsel %vm626_vm4, %v628_v26, %v624_v28  ;;  %v649_v44 = vsel %vm648_vm5, %v1063_v39, %v647_v43 }
 0x10e   : > { %v630_v30 = vmul.f32 %v629_v29, %v605_v27 }
 0x110   : > { %v915_v31 = vclamps-f32 %v630_v30, 1.0 }
 0x112   : > { %v633_v33 = vadd.f32 1.0, %v915_v31 }
 0x114   : > { %v634_v35 = vmul.f32 %v633_v33, %v591_v32 }
 0x116   : > { %v637_v36 = vadd.f32 %v636_v34, %v634_v35 }
 0x118   : > { %v640_v37 = vsel %vm278_vm0, %v637_v36, 0.0 }
 0x119   : > { %641 = vadd.xlane.f32.xlu0 %v640_v37 }
 0x18c   : > { %v642_v45 = vpop.xlane.xlu0 %641 }
 0x18d   : > { %v650_v46 = vmul.f32 %v649_v44, %v642_v45 }
 0x18f   : > { %v651_v47 = vsub.f32 %v637_v36, %v650_v46 }
 0x191   : > { %v652_v48 = vmul.f32 %v651_v47, %v651_v47 }
 0x193   : > { %v653_v49 = vsel %vm278_vm0, %v652_v48, 0.0 }
 0x194   : > { %654 = vadd.xlane.f32.xlu0 %v653_v49 }
 0x207   : > { %v655_v50 = vpop.xlane.xlu0 %654 }
 0x208   : > { %v656_v51 = vmul.f32 %v655_v50, %v649_v44 }
 0x20a   : > { %v657_v52 = vadd.f32 1e-05, %v656_v51 }
 0x20c   : > { %1064 = vrsqrt.f32 %v657_v52  ;;  %vm664_vm7 = vweird.f32 %v657_v52 }
 0x212   : > { %v1065_v53 = vpop.eup %1064 }
 0x213   : > { %v659_v54 = vmul.f32 %v1065_v53, %v657_v52  ;;  %vm665_vm6 = vweird.f32 %v1065_v53 }
 0x214   : > { %vm666_vm8 = vmor %vm664_vm7, %vm665_vm6 }
 0x215   : > { %v660_v55 = vmul.f32 %v1065_v53, %v659_v54 }
 0x217   : > { %v661_v56 = vmul.f32 0.5, %v660_v55 }
 0x219   : > { %v662_v57 = vsub.f32 1.5, %v661_v56 }
 0x21b   : > { %v663_v58 = vmul.f32 %v1065_v53, %v662_v57 }
 0x21d   : > { %v667_v60 = vsel %vm666_vm8, %v1065_v53, %v663_v58 }
 0x21e   : > { %v668_v62 = vmul.f32 %v667_v60, %v651_v47 }
 0x220   : > { %v672_v63 = vmul.f32 %v1058_v59, %v668_v62 }
 0x222   : > { %v676_v0 = vadd.f32 %v1059_v61, %v672_v63 }
 0x224   : > { %v677_v1 = vpack.c.bf16 %v676_v0, %v676_v0 }
 0x226   : > { %679 = vst.msk [vmem:[%s275_s4] sm:$0xf] %vm678_vm9, %v677_v1 }
 0x227   : > { %1153 = shalt.err (!%p1150_p5)
}
 0x228   : > { %944 = dma.vmem_to_hbm [thread:$0]  (%p1361_p6), %s696_s5, 64, %s698_s6, %s681_s7  }
 0x229 PF: > { %s1552_s10 = sld [smem:[#allocation12_spill]]  ;;  %p961_p7 = scmp.ge.s32.totalorder %s1252_s28, 2 }
 0x22b   : > { %p955_p8 = pnand %p961_p7, %p1367_p10 }
 0x22d   : > { %p956_p9 = pneg %p955_p8 }
 0x22f   : > { %s709_s16 = sand.u32 1, %s1552_s10  }
 0x230   : > { %s710_s30 = scalar_lea.sflag [#allocation5], %s709_s16 }
 0x231   : > { %1207 = dma.done.wait (%p956_p9), %s710_s30, 64  }
 0x232   : > { %1209 = vsyncadd (%p956_p9), %s710_s30, 4294967232  ;;  %s22_s28 = sadd.s32 1, %s1252_s28   ;;  %s1554_s25 = smov %s1409_s18 }
 0x233   : > { %p19_p12 = scmp.ge.s32.totalorder %s22_s28, 6   ;;  %s1555_s24 = sld [smem:[#allocation13_spill]] }
 0x234   : > { %s1556_s26 = sld [smem:[#allocation16_spill]]  ;;  %s1558_s18 = smov %s1216_s19 }
 0x235   : > { %s1557_s3 = sld [smem:[#allocation17_spill]]  ;;  %s1559_s19 = smov %s1220_s20 }
 0x236   : > { %s1560_s20 = smov %s1554_s25  ;;  %s1561_s21 = smov %s1228_s22 }
 0x237   : > { %s1562_s22 = smov %s1232_s23  ;;  %s1563_s23 = smov %s1406_s9 }
 0x238   : > { %s1564_s25 = smov %s1248_s27  ;;  %21 = sbr.rel (!%p19_p12) target bundleno = 15 (0xf), region = 105 }
 0x23b   : > { %s1565_s27 = smov %s1557_s3 }
 0x23d   :  { %716 = vsyncpa [#allocation4], 1 }
 0x23e   :  { %718 = vsyncpa [#allocation4 + $0x1], 1 }
 0x23f   :  { %719 = vsyncpa [#allocation7], 1 }
 0x240   :  { %720 = vsyncpa [#allocation5], 1 }
 0x241   :  { %722 = vsyncpa [#allocation5 + $0x1], 1 }

</bundles_post_ra>
